<compile_context>
chip_gen: v6e
topology: v6e:2x2x1
jax: 0.10.0
libtpu: 0.0.40
codegen_flags: <defaults>
</compile_context>

<pallas_src>
import functools

import jax
import jax.numpy as jnp
from jax import lax
from jax.experimental import pallas as pl
from jax.experimental.pallas import tpu as pltpu

NUM_CLASSES = 5
C_PAD = 8            # padded class width: one 8-row sublane group (was 128)
NEG_PAD = -1e30      # f32 bias of padded classes: exp -> 0, never the max


# ---------------------------------------------------------------------------
# Kernel bodies
# ---------------------------------------------------------------------------
def _logits(x_ref, w_ref, b_ref):
    # x: (tm, D), w: (C_PAD, D) in native nn.Linear layout -> (tm, C_PAD)
    return lax.dot_general(
        x_ref[...], w_ref[...],
        dimension_numbers=(((1,), (1,)), ((), ())),
        preferred_element_type=jnp.float32,
    ) + b_ref[...]


def _partial_ce_sum(logits, y_ref, tm, batch):
    # Numerically stable log-sum-exp over the 8 padded lanes
    # (padded lanes carry a -1e30 bias -> exp == 0, never the max).
    m = jnp.max(logits, axis=-1, keepdims=True)
    lse = m + jnp.log(jnp.sum(jnp.exp(logits - m), axis=-1, keepdims=True))
    # True-class logit via one-hot compare (no dynamic gather on TPU).
    class_ids = lax.broadcasted_iota(jnp.int32, logits.shape, 1)
    onehot = (class_ids == y_ref[...]).astype(jnp.float32)
    true_logit = jnp.sum(logits * onehot, axis=-1, keepdims=True)
    # Rows past `batch` belong to the ragged last block (undefined data);
    # jnp.where is a select, so any NaN/Inf there is safely suppressed.
    rows = pl.program_id(0) * tm + lax.broadcasted_iota(jnp.int32, (tm, 1), 0)
    per_row = jnp.where(rows < batch, lse - true_logit, 0.0)
    return jnp.sum(per_row)


def _linear_kernel(x_ref, w_ref, b_ref, o_ref):
    o_ref[...] = _logits(x_ref, w_ref, b_ref)


def _loss_kernel(x_ref, w_ref, b_ref, y_ref, loss_ref, *, tm, batch):
    # Loss-only: no logits output -> no logits HBM writeback at all.
    logits = _logits(x_ref, w_ref, b_ref)
    loss_ref[0, 0] = _partial_ce_sum(logits, y_ref, tm, batch)


def _fused_kernel(x_ref, w_ref, b_ref, y_ref, o_ref, loss_ref, *, tm, batch):
    logits = _logits(x_ref, w_ref, b_ref)
    o_ref[...] = logits
    loss_ref[0, 0] = _partial_ce_sum(logits, y_ref, tm, batch)


# ---------------------------------------------------------------------------
# Tiling / VMEM budgeting
# ---------------------------------------------------------------------------
def _vmem_capacity_bytes():
    try:
        info = pltpu.get_tpu_info()
        cap = getattr(info, "vmem_capacity_bytes", None)
        if cap:
            return int(cap)
    except Exception:
        pass
    return 64 * 1024 * 1024  # conservative default (v7x per-TensorCore VMEM)


def _working_set_bytes(tm, d, with_logits, with_labels):
    # Everything pipelined by BlockSpec is double-buffered.
    total = 2 * tm * d * 4                      # x tile
    if with_logits:
        total += 2 * tm * C_PAD * 4             # logits tile
    if with_labels:
        total += 2 * tm * 4                     # y tile (int32)
    total += 2 * (C_PAD * d * 4 + C_PAD * 4)    # weight + bias (invariant)
    return total


def _choose_tile_m(batch, d, with_logits, with_labels):
    # ~1/8 of per-core VMEM for the pipelined working set:
    # ~8 MiB on v7x (64 MiB/TC), ~16 MiB on v5e/v6e (128 MiB).
    budget = _vmem_capacity_bytes() // 8
    row_bytes = 2 * 4 * d
    if with_logits:
        row_bytes += 2 * 4 * C_PAD
    if with_labels:
        row_bytes += 2 * 4
    fixed = 2 * 4 * (C_PAD * d + C_PAD)         # weight + bias double-buffers
    tm = max(8, min(2048, (budget - fixed) // row_bytes))
    tm -= tm % 8
    b8 = -(-batch // 8) * 8
    tm = min(tm, b8)
    # v7x has 2 TensorCores: keep >= 2 grid tiles so the "parallel" batch
    # axis actually shards across both cores.
    if batch >= 16:
        half = -(-batch // 2)
        half8 = -(-half // 8) * 8
        tm = min(tm, half8)
    return max(tm, 8)


def _vmem_limit_bytes(tm, d, with_logits, with_labels):
    cap = _vmem_capacity_bytes()
    limit = _working_set_bytes(tm, d, with_logits, with_labels) + (4 << 20)
    return int(min(max(limit, 16 << 20), cap // 2))


# ---------------------------------------------------------------------------
# Wrapper (TorchModel.forward equivalent)
# ---------------------------------------------------------------------------
def torch_model_forward(x, weight, bias, y=None, return_logits=False):
    """Pallas equivalent of TorchModel.forward.

    x: (B, D) f32, weight: (5, D) f32 (native nn.Linear layout), bias: (5,),
    y: optional (B,) int class indices.
    Returns logits (B, 5) if y is None, else the mean cross-entropy loss
    (optionally also the logits from a single fused kernel call).
    Note: out-of-range labels (y >= 5) contribute true_logit = 0 rather than
    raising, unlike torch.nn.CrossEntropyLoss.
    """
    b, d = x.shape
    x = x.astype(jnp.float32)
    w_p = jnp.zeros((C_PAD, d), jnp.float32).at[:NUM_CLASSES].set(
        weight.astype(jnp.float32))
    b_p = jnp.full((1, C_PAD), NEG_PAD, jnp.float32).at[0, :NUM_CLASSES].set(
        bias.astype(jnp.float32))

    with_labels = y is not None
    with_logits = (y is None) or return_logits
    tm = _choose_tile_m(b, d, with_logits, with_labels)
    num_tiles = pl.cdiv(b, tm)           # ragged last block handled by Pallas
    grid = (num_tiles,)

    x_spec = pl.BlockSpec((tm, d), lambda i: (i, 0))
    w_spec = pl.BlockSpec((C_PAD, d), lambda i: (0, 0))
    bias_spec = pl.BlockSpec((1, C_PAD), lambda i: (0, 0))
    logits_spec = pl.BlockSpec((tm, C_PAD), lambda i: (i, 0))
    loss_spec = pl.BlockSpec((1, 1), lambda i: (i, 0), memory_space=pltpu.SMEM)

    cparams = pltpu.CompilerParams(
        dimension_semantics=("parallel",),
        vmem_limit_bytes=_vmem_limit_bytes(tm, d, with_logits, with_labels),
    )

    if y is None:
        cost = pl.CostEstimate(
            flops=2 * b * d * C_PAD + b * C_PAD,
            transcendentals=0,
            bytes_accessed=4 * (b * d + C_PAD * d + C_PAD + b * C_PAD),
        )
        logits = pl.pallas_call(
            _linear_kernel,
            out_shape=jax.ShapeDtypeStruct((b, C_PAD), jnp.float32),
            grid=grid,
            in_specs=[x_spec, w_spec, bias_spec],
            out_specs=logits_spec,
            compiler_params=cparams,
            cost_estimate=cost,
        )(x, w_p, b_p)
        return logits[:, :NUM_CLASSES]

    y_p = y.astype(jnp.int32).reshape(b, 1)
    y_spec = pl.BlockSpec((tm, 1), lambda i: (i, 0))

    if return_logits:
        cost = pl.CostEstimate(
            flops=2 * b * d * C_PAD + 10 * b * C_PAD,
            transcendentals=b * C_PAD + b,
            bytes_accessed=4 * (b * d + C_PAD * d + C_PAD + b
                                + b * C_PAD + num_tiles),
        )
        logits, partial = pl.pallas_call(
            functools.partial(_fused_kernel, tm=tm, batch=b),
            out_shape=(
                jax.ShapeDtypeStruct((b, C_PAD), jnp.float32),
                jax.ShapeDtypeStruct((num_tiles, 1), jnp.float32),
            ),
            grid=grid,
            in_specs=[x_spec, w_spec, bias_spec, y_spec],
            out_specs=(logits_spec, loss_spec),
            compiler_params=cparams,
            cost_estimate=cost,
        )(x, w_p, b_p, y_p)
        loss = jnp.sum(partial) / b      # CrossEntropyLoss mean reduction
        return loss, logits[:, :NUM_CLASSES]

    # Loss-only path: no logits output emitted (dominant HBM traffic removed).
    cost = pl.CostEstimate(
        flops=2 * b * d * C_PAD + 10 * b * C_PAD,
        transcendentals=b * C_PAD + b,
        bytes_accessed=4 * (b * d + C_PAD * d + C_PAD + b + num_tiles),
    )
    partial = pl.pallas_call(
        functools.partial(_loss_kernel, tm=tm, batch=b),
        out_shape=jax.ShapeDtypeStruct((num_tiles, 1), jnp.float32),
        grid=grid,
        in_specs=[x_spec, w_spec, bias_spec, y_spec],
        out_specs=loss_spec,
        compiler_params=cparams,
        cost_estimate=cost,
    )(x, w_p, b_p, y_p)
    return jnp.sum(partial) / b


if __name__ == "__main__":
    B = 8            # batch
    INPUT_SIZE = 32  # feature dim

    key = jax.random.PRNGKey(0)
    kx, kw, kb, ky = jax.random.split(key, 4)

    x = jax.random.normal(kx, (B, INPUT_SIZE), dtype=jnp.float32)
    weight = jax.random.normal(kw, (NUM_CLASSES, INPUT_SIZE), dtype=jnp.float32) * 0.1
    bias = jax.random.normal(kb, (NUM_CLASSES,), dtype=jnp.float32) * 0.1
    y = jax.random.randint(ky, (B,), 0, NUM_CLASSES, dtype=jnp.int32)

    # Inference path (y=None): returns logits (B, 5).
    logits = torch_model_forward(x, weight, bias)
    logits = jax.block_until_ready(logits)

    # Training path, loss only: no logits writeback at all.
    loss_only = torch_model_forward(x, weight, bias, y)
    loss_only = jax.block_until_ready(loss_only)

    # Training path, fused loss + logits from one pallas_call.
    loss_fused, logits_fused = torch_model_forward(x, weight, bias, y,
                                                   return_logits=True)
    loss_fused = jax.block_until_ready(loss_fused)

    # Pure-JAX reference.
    ref_logits = x @ weight.T + bias
    ref_loss = jnp.mean(
        jax.nn.logsumexp(ref_logits, axis=-1)
        - jnp.take_along_axis(ref_logits, y[:, None], axis=-1)[:, 0]
    )

    assert jnp.allclose(logits, ref_logits, atol=1e-5), "logits mismatch"
    assert jnp.allclose(logits_fused, ref_logits, atol=1e-5), "fused logits mismatch"
    assert jnp.allclose(loss_only, ref_loss, atol=1e-5), "loss (loss-only) mismatch"
    assert jnp.allclose(loss_fused, ref_loss, atol=1e-5), "loss (fused) mismatch"

    print("KERNEL_OK")
</pallas_src>

<mosaic_0001>
module attributes {stable_mosaic.version = 11 : i64} {
  func.func @_linear_kernel(%arg0: i32, %arg1: memref<8x32xf32, #tpu.memory_space<vmem>>, %arg2: memref<8x32xf32, #tpu.memory_space<vmem>>, %arg3: memref<1x8xf32, #tpu.memory_space<vmem>>, %arg4: memref<8x8xf32, #tpu.memory_space<vmem>>) attributes {dimension_semantics = [#tpu.dimension_semantics<parallel>], iteration_bounds = array<i64: 1>, scalar_prefetch = 0 : i64, scratch_operands = 0 : i64, tpu.core_type = #tpu.core_type<tc>, window_params = [{transform_indices = @transform_0, window_bounds = array<i64: 8, 32>}, {pipeline_mode = #tpu.pipeline_mode<synchronous>, transform_indices = @transform_1, window_bounds = array<i64: 8, 32>}, {pipeline_mode = #tpu.pipeline_mode<synchronous>, transform_indices = @transform_2, window_bounds = array<i64: 1, 8>}, {transform_indices = @transform_3, window_bounds = array<i64: 8, 8>}]} {
    %c0 = arith.constant 0 : index
    %c0_0 = arith.constant 0 : index
    %0 = vector.load %arg1[%c0, %c0_0] : memref<8x32xf32, #tpu.memory_space<vmem>>, vector<8x32xf32>
    %c0_1 = arith.constant 0 : index
    %c0_2 = arith.constant 0 : index
    %1 = vector.load %arg2[%c0_1, %c0_2] : memref<8x32xf32, #tpu.memory_space<vmem>>, vector<8x32xf32>
    %cst = arith.constant dense<0.000000e+00> : vector<8x8xf32>
    %2 = tpu.matmul %0, %1, %cst {dimension_numbers = #tpu.dot_dimension_numbers<[1], [1], [0], [0], [0, 0, 1, 0], [], []>} : vector<8x32xf32>, vector<8x32xf32>, vector<8x8xf32> -> vector<8x8xf32>
    %c0_3 = arith.constant 0 : index
    %c0_4 = arith.constant 0 : index
    %3 = vector.load %arg3[%c0_3, %c0_4] : memref<1x8xf32, #tpu.memory_space<vmem>>, vector<1x8xf32>
    %4 = vector.broadcast %3 : vector<1x8xf32> to vector<8x8xf32>
    %5 = arith.addf %2, %4 : vector<8x8xf32>
    %c0_5 = arith.constant 0 : index
    %c0_6 = arith.constant 0 : index
    %6 = vector.load %arg4[%c0_5, %c0_6] : memref<8x8xf32, #tpu.memory_space<vmem>>, vector<8x8xf32>
    tpu.vector_store %arg4[%c0_5, %c0_6], %5 {strides = array<i32>} : memref<8x8xf32, #tpu.memory_space<vmem>>, vector<8x8xf32>,
    return
  }
  func.func @transform_0(%arg0: i32) -> (i32, i32) {
    %c0_i32 = arith.constant 0 : i32
    %c0_i32_0 = arith.constant 0 : i32
    return %arg0, %c0_i32 : i32, i32
  }
  func.func @transform_1(%arg0: i32) -> (i32, i32) {
    %c0_i32 = arith.constant 0 : i32
    %c0_i32_0 = arith.constant 0 : i32
    %c0_i32_1 = arith.constant 0 : i32
    return %c0_i32, %c0_i32_0 : i32, i32
  }
  func.func @transform_2(%arg0: i32) -> (i32, i32) {
    %c0_i32 = arith.constant 0 : i32
    %c0_i32_0 = arith.constant 0 : i32
    %c0_i32_1 = arith.constant 0 : i32
    return %c0_i32, %c0_i32_0 : i32, i32
  }
  func.func @transform_3(%arg0: i32) -> (i32, i32) {
    %c0_i32 = arith.constant 0 : i32
    %c0_i32_0 = arith.constant 0 : i32
    return %arg0, %c0_i32 : i32, i32
  }
}

</mosaic_0001>

<bundles_post_ra>
// kernel: tpu_custom_call.1
= control target key start
LH: loop header
LB: loop body
LE: loop exit
PB: predicated region body
PF: predicated region fallthrough
CT: control target
= control target key end

     0   :  { %8 = vsyncpa [#allocation3], 0  ;;  %s261_s0 = inlined_call_operand.hbm [shape: f32[8,32], index: 0, kind: input, shape index: {}]   ;;  %s262_s1 = inlined_call_operand.hbm [shape: f32[8,32], index: 1, kind: input, shape index: {}]   ;;  %s263_s2 = inlined_call_operand.vmem [shape: f32[1,8], index: 2, kind: input, shape index: {}]   ;;  %s264_s3 = inlined_call_operand.hbm [shape: f32[8,8], index: 3, kind: output, shape index: {}]  }
   0x1   :  { %9 = vsyncpa [#allocation6], 0 }
   0x2   :  { %10 = vsyncpa [#allocation4], 0  ;;  %s224_s12 = smov [#allocation2]   ;;  %s225_s14 = smov [#allocation5]  }
   0x3   :  { %s17_s13 = sshll.u32 %s224_s12, 4  ;;  %s27_s15 = sshll.u32 %s225_s14, 4  ;;  %s18_s13 = int_to_ptr.vmem [resolvable:$true] %s17_s13  ;;  %s28_s15 = int_to_ptr.vmem [resolvable:$true] %s27_s15 }
   0x4   :  { %s166_s16 = scalar_lea.vmem %s18_s13, 128  ;;  %p171_p1 = scmp.lt.s32.totalorder %s18_s13, %s18_s13 }
   0x5   :  { %p167_p0 = scmp.ne.s32.totalorder %s18_s13, %s166_s16  ;;  %p172_p2 = scmp.lt.s32.totalorder %s166_s16, %s166_s16 }
   0x7   :  { %p173_p3 = por %p172_p2, %p171_p1 }
   0x9   :  { %p174_p4 = pnand %p173_p3, %p167_p0 }
   0xb   :  { %177 = shalt.err (!%p174_p4)
}
   0xc   :  { %20 = dma.hbm_to_vmem [thread:$0]  %s261_s0, 128, %s18_s13, [#allocation3]  }
   0xd   :  { %s186_s19 = scalar_lea.vmem %s28_s15, 128  ;;  %p191_p6 = scmp.lt.s32.totalorder %s28_s15, %s28_s15 }
   0xe   :  { %p187_p5 = scmp.ne.s32.totalorder %s28_s15, %s186_s19  ;;  %p192_p7 = scmp.lt.s32.totalorder %s186_s19, %s186_s19 }
  0x10   :  { %p193_p8 = por %p192_p7, %p191_p6 }
  0x12   :  { %p194_p9 = pnand %p193_p8, %p187_p5 }
  0x14   :  { %197 = shalt.err (!%p194_p9)
}
  0x15   :  { %30 = dma.hbm_to_vmem [thread:$0]  %s262_s1, 128, %s28_s15, [#allocation6]  }
  0x16   :  { %218 = dma.done.wait [#allocation3], 128  }
  0x17   :  { %219 = vsyncadd [#allocation3], 4294967168 }
  0x18   :  { %220 = dma.done.wait [#allocation6], 128  }
  0x19   :  { %221 = vsyncadd [#allocation6], 4294967168  ;;  %v226_v0 = vmov 0.0   ;;  %vm227_vm0 = vmmov 0   ;;  %vm48_vm1 = vcmask 261120   ;;  %v40_v1 = vld [vmem:[#allocation5] sm:$0xff] }
  0x1a   :  { %148 = vmatprep.subr.mxu0 %v226_v0  ;;  %150 = vmatprep.mubr.msk.f32.mxu0 %vm227_vm0, %v226_v0  ;;  %v39_v2 = vld [vmem:[#allocation2] sm:$0xff]  ;;  %s228_s23 = smov [#allocation7]   ;;  %vm125_vm2 = vcmask 64512  }
  0x1b   :  { %149 = vmatpush3.xpose.msk.msra.mxu0 %vm48_vm1, %v40_v1  ;;  %v143_v3 = vld [vmem:[%s263_s2] ss:$0 sm:$0xff]  ;;  %s133_s24 = sshll.u32 %s228_s23, 4  ;;  %s134_s24 = int_to_ptr.vmem [resolvable:$true] %s133_s24 }
  0x1c   :  { %s198_s1 = scalar_lea.vmem %s134_s24, 128  ;;  %p203_p11 = scmp.lt.s32.totalorder %s134_s24, %s134_s24 }
  0x1d   :  { %p199_p10 = scmp.ne.s32.totalorder %s134_s24, %s198_s1  ;;  %p204_p12 = scmp.lt.s32.totalorder %s198_s1, %s198_s1 }
  0x1e   :  { %151 = vmatmul.mubr.msk.f32.vlgmr.msra.gmra.mxu0 %vm48_vm1, %v39_v2 }
  0x1f   :  { %p205_p13 = por %p204_p12, %p203_p11 }
  0x21   :  { %p206_p0 = pnand %p205_p13, %p199_p10 }
  0xde   :  { %v121_v4 = vpop.f32.mrf.mxu0 }
  0xdf   :  { %v122_v5 = vadd.f32 %v143_v3, %v121_v4 }
  0xe0   :  { %v152_v6 = vpop.f32.mrf.mxu0 }
  0xe1   :  { %126 = vst.msk [vmem:[#allocation7] sm:$0xff] %vm125_vm2, %v122_v5 }
  0xe2   :  { %209 = shalt.err (!%p206_p0)
}
  0xe3   :  { %136 = dma.vmem_to_hbm [thread:$0]  %s134_s24, 128, %s264_s3, [#allocation4]  }
  0xe4   :  { %222 = dma.done.wait [#allocation4], 128  }
  0xe5   :  { %223 = vsyncadd [#allocation4], 4294967168 }
  0xe6   :  { %140 = vsyncpa [#allocation3], 1 }
  0xe7   :  { %141 = vsyncpa [#allocation6], 1 }
  0xe8   :  { %142 = vsyncpa [#allocation4], 1 }

</bundles_post_ra>
